<compile_context>
chip_gen: v5e
topology: v5e:2x2
jax: 0.10.0
libtpu: 0.0.40
codegen_flags: <defaults>
</compile_context>

<pallas_src>
import functools

import jax
import jax.numpy as jnp
from jax.experimental import pallas as pl
from jax.experimental.pallas import tpu as pltpu


def _make_fused_kernel(num_layers):
    """Build a kernel that applies `num_layers` Linear+ReLU layers in one body."""

    def kernel(*refs):
        # refs = (x_ref, w0_ref, b0_ref, w1_ref, b1_ref, ..., o_ref)
        x_ref = refs[0]
        o_ref = refs[-1]
        param_refs = refs[1:-1]

        x = x_ref[...]  # (B, Cin) fp32, lives in vregs across the unrolled chain
        for li in range(num_layers):
            w = param_refs[2 * li][...]        # (Cin, Cout)
            b = param_refs[2 * li + 1][...]    # (1, Cout) -> broadcasts over batch
            y = jnp.dot(x, w, preferred_element_type=jnp.float32) + b
            x = jnp.maximum(y, 0.0)
        o_ref[...] = x.astype(o_ref.dtype)

    return kernel


def final_expert_forward(x, params):
    """Fused forward pass: relu(... relu(relu(x @ W0 + b0) @ W1 + b1) ...).

    x:      (B, input_size) float32
    params: list of (w_t, b) with w_t: (Cin, Cout), b: (1, Cout)
    """
    num_layers = len(params)
    flat_params = []
    for (w_t, b) in params:
        flat_params.append(w_t)
        flat_params.append(b)

    B = x.shape[0]
    Cout_final = params[-1][0].shape[1]

    kernel = _make_fused_kernel(num_layers)

    # Rough advisory cost estimate (flops = 2*B*Cin*Cout summed over layers).
    flops = sum(2 * B * w.shape[0] * w.shape[1] for (w, _) in params)
    bytes_accessed = (
        x.size * 4
        + sum(w.size * 4 + b.size * 4 for (w, b) in params)
        + B * Cout_final * 4
    )
    cost = pl.CostEstimate(flops=flops, transcendentals=0, bytes_accessed=bytes_accessed)

    return pl.pallas_call(
        kernel,
        out_shape=jax.ShapeDtypeStruct((B, Cout_final), jnp.float32),
        in_specs=[pl.BlockSpec(memory_space=pltpu.VMEM)] * (1 + 2 * num_layers),
        out_specs=pl.BlockSpec(memory_space=pltpu.VMEM),
        cost_estimate=cost,
    )(x, *flat_params)


# jit so the single custom call is scheduled in one XLA program.
final_expert_forward_jit = jax.jit(final_expert_forward)


def make_final_expert_params(key, input_size=144, output_size=2):
    """Replicates FinalExpert.__init__ layer-size schedule with deterministic init
    (PyTorch-style uniform(-1/sqrt(fan_in), 1/sqrt(fan_in)))."""
    sizes = []
    current = input_size
    while True:
        nxt = int(current / 1.5)
        if nxt <= output_size:
            sizes.append((current, output_size))
            break
        sizes.append((current, nxt))
        current = nxt

    params = []
    for (cin, cout) in sizes:
        key, kw, kb = jax.random.split(key, 3)
        bound = 1.0 / (cin ** 0.5)
        # Store weight already transposed: (cin, cout) so kernel does x @ W.
        w_t = jax.random.uniform(kw, (cin, cout), jnp.float32, -bound, bound)
        b = jax.random.uniform(kb, (1, cout), jnp.float32, -bound, bound)
        params.append((w_t, b))
    return params


if __name__ == "__main__":
    key = jax.random.PRNGKey(0)
    k_in, k_param = jax.random.split(key)

    batch = 8
    input_size = 144
    output_size = 2

    x = jax.random.normal(k_in, (batch, input_size), jnp.float32)
    params = make_final_expert_params(k_param, input_size, output_size)

    out = final_expert_forward_jit(x, params)
    out = jax.block_until_ready(out)

    # Reference check in plain JAX (same math: relu(x @ W + b) chained; ReLU is
    # applied after every layer including the last, matching the PyTorch module).
    ref = x
    for (w_t, b) in params:
        ref = jnp.maximum(ref @ w_t + b, 0.0)

    assert out.shape == (batch, output_size)
    assert jnp.allclose(out, ref, atol=1e-5, rtol=1e-5)

    print("KERNEL_OK")
</pallas_src>

<mosaic_0001>
module attributes {stable_mosaic.version = 11 : i64} {
  func.func @kernel(%arg0: memref<8x144xf32, #tpu.memory_space<vmem>>, %arg1: memref<144x96xf32, #tpu.memory_space<vmem>>, %arg2: memref<1x96xf32, #tpu.memory_space<vmem>>, %arg3: memref<96x64xf32, #tpu.memory_space<vmem>>, %arg4: memref<1x64xf32, #tpu.memory_space<vmem>>, %arg5: memref<64x42xf32, #tpu.memory_space<vmem>>, %arg6: memref<1x42xf32, #tpu.memory_space<vmem>>, %arg7: memref<42x28xf32, #tpu.memory_space<vmem>>, %arg8: memref<1x28xf32, #tpu.memory_space<vmem>>, %arg9: memref<28x18xf32, #tpu.memory_space<vmem>>, %arg10: memref<1x18xf32, #tpu.memory_space<vmem>>, %arg11: memref<18x12xf32, #tpu.memory_space<vmem>>, %arg12: memref<1x12xf32, #tpu.memory_space<vmem>>, %arg13: memref<12x8xf32, #tpu.memory_space<vmem>>, %arg14: memref<1x8xf32, #tpu.memory_space<vmem>>, %arg15: memref<8x5xf32, #tpu.memory_space<vmem>>, %arg16: memref<1x5xf32, #tpu.memory_space<vmem>>, %arg17: memref<5x3xf32, #tpu.memory_space<vmem>>, %arg18: memref<1x3xf32, #tpu.memory_space<vmem>>, %arg19: memref<3x2xf32, #tpu.memory_space<vmem>>, %arg20: memref<1x2xf32, #tpu.memory_space<vmem>>, %arg21: memref<8x2xf32, #tpu.memory_space<vmem>>) attributes {dimension_semantics = [], scalar_prefetch = 0 : i64, scratch_operands = 0 : i64, tpu.core_type = #tpu.core_type<tc>} {
    %c0 = arith.constant 0 : index
    %c0_0 = arith.constant 0 : index
    %0 = vector.load %arg0[%c0, %c0_0] : memref<8x144xf32, #tpu.memory_space<vmem>>, vector<8x144xf32>
    %c0_1 = arith.constant 0 : index
    %c0_2 = arith.constant 0 : index
    %1 = vector.load %arg1[%c0_1, %c0_2] : memref<144x96xf32, #tpu.memory_space<vmem>>, vector<144x96xf32>
    %c0_3 = arith.constant 0 : index
    %c0_4 = arith.constant 0 : index
    %2 = vector.load %arg2[%c0_3, %c0_4] : memref<1x96xf32, #tpu.memory_space<vmem>>, vector<1x96xf32>
    %cst = arith.constant dense<0.000000e+00> : vector<8x96xf32>
    %3 = tpu.matmul %0, %1, %cst {dimension_numbers = #tpu.dot_dimension_numbers<[1], [0], [0], [1], [0, 0, 1, 1], [], []>} : vector<8x144xf32>, vector<144x96xf32>, vector<8x96xf32> -> vector<8x96xf32>
    %4 = vector.broadcast %2 : vector<1x96xf32> to vector<8x96xf32>
    %5 = arith.addf %3, %4 : vector<8x96xf32>
    %cst_5 = arith.constant 0.000000e+00 : f32
    %6 = vector.broadcast %cst_5 : f32 to vector<8x96xf32>
    %7 = arith.maximumf %5, %6 : vector<8x96xf32>
    %c0_6 = arith.constant 0 : index
    %c0_7 = arith.constant 0 : index
    %8 = vector.load %arg3[%c0_6, %c0_7] : memref<96x64xf32, #tpu.memory_space<vmem>>, vector<96x64xf32>
    %c0_8 = arith.constant 0 : index
    %c0_9 = arith.constant 0 : index
    %9 = vector.load %arg4[%c0_8, %c0_9] : memref<1x64xf32, #tpu.memory_space<vmem>>, vector<1x64xf32>
    %cst_10 = arith.constant dense<0.000000e+00> : vector<8x64xf32>
    %10 = tpu.matmul %7, %8, %cst_10 {dimension_numbers = #tpu.dot_dimension_numbers<[1], [0], [0], [1], [0, 0, 1, 1], [], []>} : vector<8x96xf32>, vector<96x64xf32>, vector<8x64xf32> -> vector<8x64xf32>
    %11 = vector.broadcast %9 : vector<1x64xf32> to vector<8x64xf32>
    %12 = arith.addf %10, %11 : vector<8x64xf32>
    %cst_11 = arith.constant 0.000000e+00 : f32
    %13 = vector.broadcast %cst_11 : f32 to vector<8x64xf32>
    %14 = arith.maximumf %12, %13 : vector<8x64xf32>
    %c0_12 = arith.constant 0 : index
    %c0_13 = arith.constant 0 : index
    %15 = vector.load %arg5[%c0_12, %c0_13] : memref<64x42xf32, #tpu.memory_space<vmem>>, vector<64x42xf32>
    %c0_14 = arith.constant 0 : index
    %c0_15 = arith.constant 0 : index
    %16 = vector.load %arg6[%c0_14, %c0_15] : memref<1x42xf32, #tpu.memory_space<vmem>>, vector<1x42xf32>
    %cst_16 = arith.constant dense<0.000000e+00> : vector<8x42xf32>
    %17 = tpu.matmul %14, %15, %cst_16 {dimension_numbers = #tpu.dot_dimension_numbers<[1], [0], [0], [1], [0, 0, 1, 1], [], []>} : vector<8x64xf32>, vector<64x42xf32>, vector<8x42xf32> -> vector<8x42xf32>
    %18 = vector.broadcast %16 : vector<1x42xf32> to vector<8x42xf32>
    %19 = arith.addf %17, %18 : vector<8x42xf32>
    %cst_17 = arith.constant 0.000000e+00 : f32
    %20 = vector.broadcast %cst_17 : f32 to vector<8x42xf32>
    %21 = arith.maximumf %19, %20 : vector<8x42xf32>
    %c0_18 = arith.constant 0 : index
    %c0_19 = arith.constant 0 : index
    %22 = vector.load %arg7[%c0_18, %c0_19] : memref<42x28xf32, #tpu.memory_space<vmem>>, vector<42x28xf32>
    %c0_20 = arith.constant 0 : index
    %c0_21 = arith.constant 0 : index
    %23 = vector.load %arg8[%c0_20, %c0_21] : memref<1x28xf32, #tpu.memory_space<vmem>>, vector<1x28xf32>
    %cst_22 = arith.constant dense<0.000000e+00> : vector<8x28xf32>
    %24 = tpu.matmul %21, %22, %cst_22 {dimension_numbers = #tpu.dot_dimension_numbers<[1], [0], [0], [1], [0, 0, 1, 1], [], []>} : vector<8x42xf32>, vector<42x28xf32>, vector<8x28xf32> -> vector<8x28xf32>
    %25 = vector.broadcast %23 : vector<1x28xf32> to vector<8x28xf32>
    %26 = arith.addf %24, %25 : vector<8x28xf32>
    %cst_23 = arith.constant 0.000000e+00 : f32
    %27 = vector.broadcast %cst_23 : f32 to vector<8x28xf32>
    %28 = arith.maximumf %26, %27 : vector<8x28xf32>
    %c0_24 = arith.constant 0 : index
    %c0_25 = arith.constant 0 : index
    %29 = vector.load %arg9[%c0_24, %c0_25] : memref<28x18xf32, #tpu.memory_space<vmem>>, vector<28x18xf32>
    %c0_26 = arith.constant 0 : index
    %c0_27 = arith.constant 0 : index
    %30 = vector.load %arg10[%c0_26, %c0_27] : memref<1x18xf32, #tpu.memory_space<vmem>>, vector<1x18xf32>
    %cst_28 = arith.constant dense<0.000000e+00> : vector<8x18xf32>
    %31 = tpu.matmul %28, %29, %cst_28 {dimension_numbers = #tpu.dot_dimension_numbers<[1], [0], [0], [1], [0, 0, 1, 1], [], []>} : vector<8x28xf32>, vector<28x18xf32>, vector<8x18xf32> -> vector<8x18xf32>
    %32 = vector.broadcast %30 : vector<1x18xf32> to vector<8x18xf32>
    %33 = arith.addf %31, %32 : vector<8x18xf32>
    %cst_29 = arith.constant 0.000000e+00 : f32
    %34 = vector.broadcast %cst_29 : f32 to vector<8x18xf32>
    %35 = arith.maximumf %33, %34 : vector<8x18xf32>
    %c0_30 = arith.constant 0 : index
    %c0_31 = arith.constant 0 : index
    %36 = vector.load %arg11[%c0_30, %c0_31] : memref<18x12xf32, #tpu.memory_space<vmem>>, vector<18x12xf32>
    %c0_32 = arith.constant 0 : index
    %c0_33 = arith.constant 0 : index
    %37 = vector.load %arg12[%c0_32, %c0_33] : memref<1x12xf32, #tpu.memory_space<vmem>>, vector<1x12xf32>
    %cst_34 = arith.constant dense<0.000000e+00> : vector<8x12xf32>
    %38 = tpu.matmul %35, %36, %cst_34 {dimension_numbers = #tpu.dot_dimension_numbers<[1], [0], [0], [1], [0, 0, 1, 1], [], []>} : vector<8x18xf32>, vector<18x12xf32>, vector<8x12xf32> -> vector<8x12xf32>
    %39 = vector.broadcast %37 : vector<1x12xf32> to vector<8x12xf32>
    %40 = arith.addf %38, %39 : vector<8x12xf32>
    %cst_35 = arith.constant 0.000000e+00 : f32
    %41 = vector.broadcast %cst_35 : f32 to vector<8x12xf32>
    %42 = arith.maximumf %40, %41 : vector<8x12xf32>
    %c0_36 = arith.constant 0 : index
    %c0_37 = arith.constant 0 : index
    %43 = vector.load %arg13[%c0_36, %c0_37] : memref<12x8xf32, #tpu.memory_space<vmem>>, vector<12x8xf32>
    %c0_38 = arith.constant 0 : index
    %c0_39 = arith.constant 0 : index
    %44 = vector.load %arg14[%c0_38, %c0_39] : memref<1x8xf32, #tpu.memory_space<vmem>>, vector<1x8xf32>
    %cst_40 = arith.constant dense<0.000000e+00> : vector<8x8xf32>
    %45 = tpu.matmul %42, %43, %cst_40 {dimension_numbers = #tpu.dot_dimension_numbers<[1], [0], [0], [1], [0, 0, 1, 1], [], []>} : vector<8x12xf32>, vector<12x8xf32>, vector<8x8xf32> -> vector<8x8xf32>
    %46 = vector.broadcast %44 : vector<1x8xf32> to vector<8x8xf32>
    %47 = arith.addf %45, %46 : vector<8x8xf32>
    %cst_41 = arith.constant 0.000000e+00 : f32
    %48 = vector.broadcast %cst_41 : f32 to vector<8x8xf32>
    %49 = arith.maximumf %47, %48 : vector<8x8xf32>
    %c0_42 = arith.constant 0 : index
    %c0_43 = arith.constant 0 : index
    %50 = vector.load %arg15[%c0_42, %c0_43] : memref<8x5xf32, #tpu.memory_space<vmem>>, vector<8x5xf32>
    %c0_44 = arith.constant 0 : index
    %c0_45 = arith.constant 0 : index
    %51 = vector.load %arg16[%c0_44, %c0_45] : memref<1x5xf32, #tpu.memory_space<vmem>>, vector<1x5xf32>
    %cst_46 = arith.constant dense<0.000000e+00> : vector<8x5xf32>
    %52 = tpu.matmul %49, %50, %cst_46 {dimension_numbers = #tpu.dot_dimension_numbers<[1], [0], [0], [1], [0, 0, 1, 1], [], []>} : vector<8x8xf32>, vector<8x5xf32>, vector<8x5xf32> -> vector<8x5xf32>
    %53 = vector.broadcast %51 : vector<1x5xf32> to vector<8x5xf32>
    %54 = arith.addf %52, %53 : vector<8x5xf32>
    %cst_47 = arith.constant 0.000000e+00 : f32
    %55 = vector.broadcast %cst_47 : f32 to vector<8x5xf32>
    %56 = arith.maximumf %54, %55 : vector<8x5xf32>
    %c0_48 = arith.constant 0 : index
    %c0_49 = arith.constant 0 : index
    %57 = vector.load %arg17[%c0_48, %c0_49] : memref<5x3xf32, #tpu.memory_space<vmem>>, vector<5x3xf32>
    %c0_50 = arith.constant 0 : index
    %c0_51 = arith.constant 0 : index
    %58 = vector.load %arg18[%c0_50, %c0_51] : memref<1x3xf32, #tpu.memory_space<vmem>>, vector<1x3xf32>
    %cst_52 = arith.constant dense<0.000000e+00> : vector<8x3xf32>
    %59 = tpu.matmul %56, %57, %cst_52 {dimension_numbers = #tpu.dot_dimension_numbers<[1], [0], [0], [1], [0, 0, 1, 1], [], []>} : vector<8x5xf32>, vector<5x3xf32>, vector<8x3xf32> -> vector<8x3xf32>
    %60 = vector.broadcast %58 : vector<1x3xf32> to vector<8x3xf32>
    %61 = arith.addf %59, %60 : vector<8x3xf32>
    %cst_53 = arith.constant 0.000000e+00 : f32
    %62 = vector.broadcast %cst_53 : f32 to vector<8x3xf32>
    %63 = arith.maximumf %61, %62 : vector<8x3xf32>
    %c0_54 = arith.constant 0 : index
    %c0_55 = arith.constant 0 : index
    %64 = vector.load %arg19[%c0_54, %c0_55] : memref<3x2xf32, #tpu.memory_space<vmem>>, vector<3x2xf32>
    %c0_56 = arith.constant 0 : index
    %c0_57 = arith.constant 0 : index
    %65 = vector.load %arg20[%c0_56, %c0_57] : memref<1x2xf32, #tpu.memory_space<vmem>>, vector<1x2xf32>
    %cst_58 = arith.constant dense<0.000000e+00> : vector<8x2xf32>
    %66 = tpu.matmul %63, %64, %cst_58 {dimension_numbers = #tpu.dot_dimension_numbers<[1], [0], [0], [1], [0, 0, 1, 1], [], []>} : vector<8x3xf32>, vector<3x2xf32>, vector<8x2xf32> -> vector<8x2xf32>
    %67 = vector.broadcast %65 : vector<1x2xf32> to vector<8x2xf32>
    %68 = arith.addf %66, %67 : vector<8x2xf32>
    %cst_59 = arith.constant 0.000000e+00 : f32
    %69 = vector.broadcast %cst_59 : f32 to vector<8x2xf32>
    %70 = arith.maximumf %68, %69 : vector<8x2xf32>
    %c0_60 = arith.constant 0 : index
    %c0_61 = arith.constant 0 : index
    %71 = vector.load %arg21[%c0_60, %c0_61] : memref<8x2xf32, #tpu.memory_space<vmem>>, vector<8x2xf32>
    tpu.vector_store %arg21[%c0_60, %c0_61], %70 {strides = array<i32>} : memref<8x2xf32, #tpu.memory_space<vmem>>, vector<8x2xf32>,
    return
  }
}

</mosaic_0001>

<bundles_post_ra>
// kernel: final_expert_forward.1
= control target key start
LH: loop header
LB: loop body
LE: loop exit
PB: predicated region body
PF: predicated region fallthrough
CT: control target
= control target key end

     0   :  { %vm92_vm0 = vcmask 130048   ;;  %vm153_vm1 = vcmask 785408   ;;  %vm229_vm2 = vcmask 1041408   ;;  %vm190_vm3 = vcmask 523264   ;;  %s811_s1 = inlined_call_operand.vmem [shape: f32[144,96], index: 1, kind: input, shape index: {}]   ;;  %s812_s3 = inlined_call_operand.vmem [shape: f32[96,64], index: 3, kind: input, shape index: {}]   ;;  %s813_s0 = inlined_call_operand.vmem [shape: f32[8,144], index: 0, kind: input, shape index: {}]   ;;  %s814_s2 = inlined_call_operand.vmem [shape: f32[1,96], index: 2, kind: input, shape index: {}]   ;;  %s815_s4 = inlined_call_operand.vmem [shape: f32[1,64], index: 4, kind: input, shape index: {}]   ;;  %s816_s5 = inlined_call_operand.vmem [shape: f32[64,42], index: 5, kind: input, shape index: {}]   ;;  %s817_s6 = inlined_call_operand.vmem [shape: f32[1,42], index: 6, kind: input, shape index: {}]   ;;  %s818_s7 = inlined_call_operand.vmem [shape: f32[42,28], index: 7, kind: input, shape index: {}]   ;;  %s819_s8 = inlined_call_operand.vmem [shape: f32[1,28], index: 8, kind: input, shape index: {}]   ;;  %s820_s9 = inlined_call_operand.vmem [shape: f32[28,18], index: 9, kind: input, shape index: {}]   ;;  %s821_s10 = inlined_call_operand.vmem [shape: f32[1,18], index: 10, kind: input, shape index: {}]   ;;  %s822_s11 = inlined_call_operand.vmem [shape: f32[18,12], index: 11, kind: input, shape index: {}]   ;;  %s823_s12 = inlined_call_operand.vmem [shape: f32[1,12], index: 12, kind: input, shape index: {}]   ;;  %s824_s13 = inlined_call_operand.vmem [shape: f32[12,8], index: 13, kind: input, shape index: {}]   ;;  %s825_s14 = inlined_call_operand.vmem [shape: f32[1,8], index: 14, kind: input, shape index: {}]   ;;  %s826_s15 = inlined_call_operand.vmem [shape: f32[8,5], index: 15, kind: input, shape index: {}]   ;;  %s827_s16 = inlined_call_operand.vmem [shape: f32[1,5], index: 16, kind: input, shape index: {}]   ;;  %s828_s17 = inlined_call_operand.vmem [shape: f32[5,3], index: 17, kind: input, shape index: {}]   ;;  %s829_s18 = inlined_call_operand.vmem [shape: f32[1,3], index: 18, kind: input, shape index: {}]   ;;  %s830_s19 = inlined_call_operand.vmem [shape: f32[3,2], index: 19, kind: input, shape index: {}]   ;;  %s831_s20 = inlined_call_operand.vmem [shape: f32[1,2], index: 20, kind: input, shape index: {}]   ;;  %s832_s21 = inlined_call_operand.vmem [shape: f32[8,2], index: 21, kind: output, shape index: {}]  }
   0x1   :  { %837 = sst [smem:[#allocation2_spill]] %s811_s1  ;;  %v220_v46 = vld [vmem:[%s818_s7 + $0x28] sm:$0x3]  ;;  %v219_v47 = vld [vmem:[%s818_s7 + $0x20] sm:$0xff]  ;;  %v218_v48 = vld [vmem:[%s818_s7 + $0x18] sm:$0xff]  ;;  %vm266_vm4 = vcmask 1043456  }
   0x2   :  { %838 = sst [smem:[#allocation3_spill]] %s812_s3  ;;  %v217_v53 = vld [vmem:[%s818_s7 + $0x10] sm:$0xff]  ;;  %v216_v54 = vld [vmem:[%s818_s7 + $0x8] sm:$0xff]  ;;  %v215_v55 = vld [vmem:[%s818_s7] sm:$0xff]  ;;  %vm225_vm5 = vcmask 343040   ;;  %vm262_vm6 = vcmask 228352  }
   0x3   :  { %839 = sst [smem:[#allocation4_spill]] %s813_s0  ;;  %v257_v56 = vld [vmem:[%s820_s9 + $0x18] sm:$0xf]  ;;  %v256_v57 = vld [vmem:[%s820_s9 + $0x10] sm:$0xff]  ;;  %v482_v58 = vld [vmem:[%s817_s6] ss:$0 sm:$0xff] }
   0x4   :  { %840 = sst [smem:[#allocation5_spill]] %s814_s2  ;;  %v255_v62 = vld [vmem:[%s820_s9 + $0x8] sm:$0xff]  ;;  %v254_v63 = vld [vmem:[%s820_s9] sm:$0xff]  ;;  %vm298_vm7 = vcmask 146432   ;;  %vm332_vm8 = vcmask 97280   ;;  %vm399_vm9 = vcmask 1044480  }
   0x5   :  { %841 = sst [smem:[#allocation6_spill]] %s815_s4  ;;  %vm365_vm10 = vcmask 64512   ;;  %vm433_vm11 = vcmask 1042432   ;;  %vm395_vm12 = vcmask 39936   ;;  %vm429_vm13 = vcmask 23552  }
   0x6   :  { %842 = sst [smem:[#allocation7_spill]] %s816_s5  ;;  %vm458_vm14 = vcmask 15360  }
   0x7   :  { %s843_s26 = sld [smem:[#allocation2_spill]] }
   0x8   :  { %s844_s27 = sld [smem:[#allocation4_spill]] }
   0x9   :  { %s845_s29 = sld [smem:[#allocation3_spill]] }
   0xa   :  { %s846_s2 = sld [smem:[#allocation7_spill]] }
   0xd   :  { %v85_v0 = vld [vmem:[%s843_s26 + $0x78] sm:$0xff]  ;;  %v84_v1 = vld [vmem:[%s843_s26 + $0x70] sm:$0xff]  ;;  %v83_v2 = vld [vmem:[%s843_s26 + $0x68] sm:$0xff] }
   0xe   :  { %96 = vmatpush.msra.mxu0 %v85_v0  ;;  %v82_v3 = vld [vmem:[%s843_s26 + $0x60] sm:$0xff]  ;;  %v81_v4 = vld [vmem:[%s843_s26 + $0x58] sm:$0xff]  ;;  %v87_v5 = vld [vmem:[%s843_s26 + $0x88] sm:$0xff] }
   0xf   :  { %130 = vmatpush.msra.mxu1 %v87_v5  ;;  %v86_v6 = vld [vmem:[%s843_s26 + $0x80] sm:$0xff]  ;;  %v69_v7 = vld [vmem:[%s844_s27 + $0x8] sm:$0xff]  ;;  %v148_v8 = vld [vmem:[%s845_s29 + $0x58] sm:$0xff] }
  0x10   :  { %97 = vmatpush.msra.mxu0 %v84_v1  ;;  %161 = vmatpush.msra.mxu2 %v148_v8  ;;  %v147_v9 = vld [vmem:[%s845_s29 + $0x50] sm:$0xff]  ;;  %v146_v11 = vld [vmem:[%s845_s29 + $0x48] sm:$0xff]  ;;  %v145_v13 = vld [vmem:[%s845_s29 + $0x40] sm:$0xff] }
  0x11   :  { %v80_v10 = vld [vmem:[%s843_s26 + $0x50] sm:$0xff]  ;;  %131 = vmatpush.msra.mxu1 %v86_v6  ;;  %v79_v12 = vld [vmem:[%s843_s26 + $0x48] sm:$0xff]  ;;  %v78_v14 = vld [vmem:[%s843_s26 + $0x40] sm:$0xff] }
  0x12   :  { %98 = vmatpush.msra.mxu0 %v83_v2  ;;  %464 = vmatmul.msk.f32.vlgmr.msra.gmra.mxu1 %vm92_vm0, %v69_v7  ;;  %v144_v15 = vld [vmem:[%s845_s29 + $0x38] sm:$0xff]  ;;  %v143_v17 = vld [vmem:[%s845_s29 + $0x30] sm:$0xff]  ;;  %v142_v19 = vld [vmem:[%s845_s29 + $0x28] sm:$0xff] }
  0x13   :  { %162 = vmatpush.msra.mxu2 %v147_v9  ;;  %v77_v16 = vld [vmem:[%s843_s26 + $0x38] sm:$0xff]  ;;  %v76_v18 = vld [vmem:[%s843_s26 + $0x30] sm:$0xff]  ;;  %v75_v20 = vld [vmem:[%s843_s26 + $0x28] sm:$0xff]  ;;  %467 = vmatpush.msk.msrb.mxu1 %vm229_vm2, %v220_v46 }
  0x14   :  { %99 = vmatpush.msra.mxu0 %v82_v3  ;;  %v141_v21 = vld [vmem:[%s845_s29 + $0x20] sm:$0xff]  ;;  %v73_v23 = vld [vmem:[%s843_s26 + $0x18] sm:$0xff]  ;;  %v72_v24 = vld [vmem:[%s843_s26 + $0x10] sm:$0xff] }
  0x15   :  { %163 = vmatpush.msra.mxu2 %v146_v11  ;;  %v74_v22 = vld [vmem:[%s843_s26 + $0x20] sm:$0xff]  ;;  %v71_v25 = vld [vmem:[%s843_s26 + $0x8] sm:$0xff]  ;;  %v140_v28 = vld [vmem:[%s845_s29 + $0x18] sm:$0xff]  ;;  %244 = vmatpush.msrb.mxu1 %v219_v47 }
  0x16   :  { %100 = vmatpush.msra.mxu0 %v81_v4  ;;  %v70_v26 = vld [vmem:[%s843_s26] sm:$0xff]  ;;  %v139_v29 = vld [vmem:[%s845_s29 + $0x10] sm:$0xff]  ;;  %v138_v30 = vld [vmem:[%s845_s29 + $0x8] sm:$0xff]  ;;  %s847_s26 = sld [smem:[#allocation5_spill]] }
  0x17   :  { %164 = vmatpush.msra.mxu2 %v145_v13  ;;  %v68_v27 = vld [vmem:[%s844_s27] sm:$0xff]  ;;  %v185_v32 = vld [vmem:[%s846_s2 + $0x38] sm:$0xff]  ;;  %v184_v33 = vld [vmem:[%s846_s2 + $0x30] sm:$0xff]  ;;  %245 = vmatpush.msrb.mxu1 %v218_v48 }
  0x18   :  { %101 = vmatpush.msra.mxu0 %v80_v10  ;;  %v137_v31 = vld [vmem:[%s845_s29] sm:$0xff]  ;;  %202 = vmatpush.msra.mxu3 %v185_v32  ;;  %v183_v34 = vld [vmem:[%s846_s2 + $0x28] sm:$0xff]  ;;  %v181_v36 = vld [vmem:[%s846_s2 + $0x18] sm:$0xff] }
  0x19   :  { %165 = vmatpush.msra.mxu2 %v144_v15  ;;  %v182_v35 = vld [vmem:[%s846_s2 + $0x20] sm:$0xff]  ;;  %v180_v43 = vld [vmem:[%s846_s2 + $0x10] sm:$0xff]  ;;  %v179_v44 = vld [vmem:[%s846_s2 + $0x8] sm:$0xff]  ;;  %246 = vmatpush.msrb.mxu1 %v217_v53 }
  0x1a   :  { %102 = vmatpush.msra.mxu0 %v79_v12  ;;  %203 = vmatpush.msra.mxu3 %v184_v33  ;;  %v178_v45 = vld [vmem:[%s846_s2] sm:$0xff]  ;;  %v293_v0 = vld [vmem:[%s822_s11 + $0x10] sm:$0x3]  ;;  %v292_v5 = vld [vmem:[%s822_s11 + $0x8] sm:$0xff] }
  0x1b   :  { %166 = vmatpush.msra.mxu2 %v143_v17  ;;  %247 = vmatpush.msrb.mxu1 %v216_v54  ;;  %v483_v1 = vld [vmem:[%s819_s8] ss:$0 sm:$0xff]  ;;  %v327_v7 = vld [vmem:[%s824_s13 + $0x8] sm:$0xf] }
  0x1c   :  { %103 = vmatpush.msra.mxu0 %v78_v14  ;;  %204 = vmatpush.msra.mxu3 %v183_v34  ;;  %v480_v37 = vld [vmem:[%s847_s26] ss:$0 sm:$0xff]  ;;  %s848_s26 = sld [smem:[#allocation6_spill]] }
  0x1d   :  { %167 = vmatpush.msra.mxu2 %v142_v19  ;;  %248 = vmatpush.msrb.mxu1 %v215_v55  ;;  %v291_v6 = vld [vmem:[%s822_s11] sm:$0xff] }
  0x1e   :  { %104 = vmatpush.msra.mxu0 %v77_v16  ;;  %205 = vmatpush.msra.mxu3 %v182_v35  ;;  %v484_v8 = vld [vmem:[%s821_s10] ss:$0 sm:$0xff] }
  0x1f   :  { %168 = vmatpush.msra.mxu2 %v141_v21  ;;  %469 = vmatpush.msk.msra.mxu1 %vm266_vm4, %v257_v56  ;;  %v326_v12 = vld [vmem:[%s824_s13] sm:$0xff] }
  0x20   :  { %105 = vmatpush.msra.mxu0 %v76_v18  ;;  %206 = vmatpush.msra.mxu3 %v181_v36  ;;  %v360_v13 = vld [vmem:[%s826_s15] sm:$0xff] }
  0x21   :  { %169 = vmatpush.msra.mxu2 %v140_v28  ;;  %283 = vmatpush.msra.mxu1 %v256_v57  ;;  %v485_v14 = vld [vmem:[%s823_s12] ss:$0 sm:$0xff] }
  0x22   :  { %106 = vmatpush.msra.mxu0 %v75_v20  ;;  %207 = vmatpush.msra.mxu3 %v180_v43  ;;  %v481_v49 = vld [vmem:[%s848_s26] ss:$0 sm:$0xff] }
  0x23   :  { %170 = vmatpush.msra.mxu2 %v139_v29  ;;  %284 = vmatpush.msra.mxu1 %v255_v62  ;;  %v390_v18 = vld [vmem:[%s828_s17] sm:$0x1f] }
  0x24   :  { %107 = vmatpush.msra.mxu0 %v74_v22  ;;  %208 = vmatpush.msra.mxu3 %v179_v44  ;;  %v486_v19 = vld [vmem:[%s825_s14] ss:$0 sm:$0xff] }
  0x25   :  { %171 = vmatpush.msra.mxu2 %v138_v30  ;;  %285 = vmatpush.msra.mxu1 %v254_v63  ;;  %v488_v28 = vld [vmem:[%s829_s18] ss:$0 sm:$0xff] }
  0x26   :  { %108 = vmatpush.msra.mxu0 %v73_v23  ;;  %209 = vmatpush.msra.mxu3 %v178_v45  ;;  %v424_v23 = vld [vmem:[%s830_s19] sm:$0x7] }
  0x27   :  { %172 = vmatpush.msra.mxu2 %v137_v31  ;;  %v489_v32 = vld [vmem:[%s831_s20] ss:$0 sm:$0xff] }
  0x28   :  { %109 = vmatpush.msra.mxu0 %v72_v24  ;;  %471 = vmatpush.msk.msrb.mxu3 %vm229_vm2, %v293_v0  ;;  %v487_v24 = vld [vmem:[%s827_s16] ss:$0 sm:$0xff] }
  0x29   :  { %384 = vmatpush.msrb.mxu2 %v360_v13 }
  0x2a   :  { %110 = vmatpush.msra.mxu0 %v71_v25  ;;  %319 = vmatpush.msrb.mxu3 %v292_v5 }
  0x2c   :  { %111 = vmatpush.msra.mxu0 %v70_v26  ;;  %320 = vmatpush.msrb.mxu3 %v291_v6 }
  0x2d   :  { %112 = vmatmul.f32.vlgmr.msra.gmra.mxu0 %v68_v27 }
  0x2e   :  { %478 = vmatpush.msk.msrb.mxu0 %vm433_vm11, %v424_v23 }
  0x8f   :  { %v133_v39 = vpop.f32.mrf.mxu1 }
  0xaa   :  { %v113_v38 = vpop.f32.mrf.mxu0 }
  0xab   :  { %v114_v40 = vadd.f32 %v480_v37, %v113_v38 }
  0xad   :  { %v134_v41 = vadd.f32 %v133_v39, %v114_v40 }
  0xaf   :  { %v136_v42 = vmax.f32 %v134_v41, 0.0 }
  0xb1   :  { %465 = vmatmul.msk.f32.vlgmr.msra.gmra.mxu2 %vm153_vm1, %v136_v42 }
 0x134   :  { %v174_v50 = vpop.f32.mrf.mxu2 }
 0x135   :  { %v175_v51 = vadd.f32 %v481_v49, %v174_v50 }
 0x137   :  { %v177_v52 = vmax.f32 %v175_v51, 0.0 }
 0x139   :  { %466 = vmatmul.msk.f32.vlgmr.msra.gmra.mxu3 %vm190_vm3, %v177_v52 }
 0x13a   :  { %476 = vmatpush.msk.msra.mxu3 %vm399_vm9, %v390_v18 }
 0x1bc   :  { %v211_v59 = vpop.f32.mrf.mxu3 }
 0x1bd   :  { %v212_v60 = vadd.f32 %v482_v58, %v211_v59 }
 0x1bf   :  { %v214_v61 = vmax.f32 %v212_v60, 0.0 }
 0x1c1   :  { %468 = vmatmul.msk.f32.vlgmr.msrb.gmra.mxu1 %vm225_vm5, %v214_v61 }
 0x1c2   :  { %473 = vmatpush.msk.msrb.mxu1 %vm266_vm4, %v327_v7 }
 0x1c4   :  { %354 = vmatpush.msrb.mxu1 %v326_v12 }
 0x23e   :  { %v250_v2 = vpop.f32.mrf.mxu1 }
 0x23f   :  { %v251_v3 = vadd.f32 %v483_v1, %v250_v2 }
 0x241   :  { %v253_v4 = vmax.f32 %v251_v3, 0.0 }
 0x243   :  { %470 = vmatmul.msk.f32.vlgmr.msra.gmra.mxu1 %vm262_vm6, %v253_v4 }
 0x2c0   :  { %v287_v9 = vpop.f32.mrf.mxu1 }
 0x2c1   :  { %v288_v10 = vadd.f32 %v484_v8, %v287_v9 }
 0x2c3   :  { %v290_v11 = vmax.f32 %v288_v10, 0.0 }
 0x2c5   :  { %472 = vmatmul.msk.f32.vlgmr.msrb.gmra.mxu3 %vm298_vm7, %v290_v11 }
 0x348   :  { %v322_v15 = vpop.f32.mrf.mxu3 }
 0x349   :  { %v323_v16 = vadd.f32 %v485_v14, %v322_v15 }
 0x34b   :  { %v325_v17 = vmax.f32 %v323_v16, 0.0 }
 0x34d   :  { %474 = vmatmul.msk.f32.vlgmr.msrb.gmra.mxu1 %vm332_vm8, %v325_v17 }
 0x3ca   :  { %v356_v20 = vpop.f32.mrf.mxu1 }
 0x3cb   :  { %v357_v21 = vadd.f32 %v486_v19, %v356_v20 }
 0x3cd   :  { %v359_v22 = vmax.f32 %v357_v21, 0.0 }
 0x3cf   :  { %475 = vmatmul.msk.f32.vlgmr.msrb.gmra.mxu2 %vm365_vm10, %v359_v22 }
 0x452   :  { %v386_v25 = vpop.f32.mrf.mxu2 }
 0x453   :  { %v387_v26 = vadd.f32 %v487_v24, %v386_v25 }
 0x455   :  { %v389_v27 = vmax.f32 %v387_v26, 0.0 }
 0x457   :  { %477 = vmatmul.msk.f32.vlgmr.msra.gmra.mxu3 %vm395_vm12, %v389_v27 }
 0x4da   :  { %v420_v29 = vpop.f32.mrf.mxu3 }
 0x4db   :  { %v421_v30 = vadd.f32 %v488_v28, %v420_v29 }
 0x4dd   :  { %v423_v31 = vmax.f32 %v421_v30, 0.0 }
 0x4df   :  { %479 = vmatmul.msk.f32.vlgmr.msrb.gmra.mxu0 %vm429_vm13, %v423_v31 }
 0x55c   :  { %v454_v33 = vpop.f32.mrf.mxu0 }
 0x55d   :  { %v455_v34 = vadd.f32 %v489_v32, %v454_v33 }
 0x55f   :  { %v457_v35 = vmax.f32 %v455_v34, 0.0 }
 0x561   :  { %459 = vst.msk [vmem:[%s832_s21] sm:$0xff] %vm458_vm14, %v457_v35 }

</bundles_post_ra>
